<compile_context>
chip_gen: v7x
topology: tpu7x:2x2x1
jax: 0.10.0
libtpu: 0.0.40
codegen_flags: <defaults>
</compile_context>

<pallas_src>
import jax
import jax.numpy as jnp
from jax.experimental import pallas as pl
from jax.experimental.pallas import tpu as pltpu

HIDDEN = 100        # logical width, matches nn.Linear(input_dim, 100)
LANE = 128
HIDDEN_PAD = 128    # padded hidden width (zero-padded cols/rows; math unchanged)
OUT_PAD = 128       # lane-dense padded output head; real output is column 0


def _round_up(x, m):
    return ((x + m - 1) // m) * m


def _discriminator_kernel(x_ref, w1_ref, b1_ref, w2_ref, b2_ref, w3_ref, b3_ref, o_ref):
    # Whole forward pass fused in VMEM for one batch tile.
    # x / weights are bf16 (MXU inputs); accumulation, bias-add and tanh are f32.
    x = x_ref[...]
    h1 = jnp.tanh(
        jnp.dot(x, w1_ref[...], preferred_element_type=jnp.float32) + b1_ref[...]
    )
    h2 = jnp.tanh(
        jnp.dot(h1.astype(jnp.bfloat16), w2_ref[...],
                preferred_element_type=jnp.float32) + b2_ref[...]
    )
    out = jnp.dot(h2.astype(jnp.bfloat16), w3_ref[...],
                  preferred_element_type=jnp.float32) + b3_ref[...]
    o_ref[...] = out.astype(o_ref.dtype)


def discriminator_forward(x, pparams, tile_b=None):
    """x: [B, D] float32.  pparams: output of pad_params() (padded bf16 weights,
    padded f32 biases).  Returns [B, 1] float32."""
    B, D = x.shape
    d_pad = pparams["d_pad"]

    if tile_b is None:
        # Largest sensible batch tile: keep MXU M occupied, trivially fits VMEM
        # (even on v7x's 64 MiB) since the whole weight set is < 100 KiB in bf16.
        tile_b = 1024 if B >= 1024 else 128
    b_pad = _round_up(B, tile_b)

    # Zero-pad batch + feature dims; cast x to bf16 (halves x DMA bytes).
    x_p = jnp.zeros((b_pad, d_pad), jnp.bfloat16)
    x_p = x_p.at[:B, :D].set(x.astype(jnp.bfloat16))

    grid = (b_pad // tile_b,)

    # x / out tiled over the batch grid axis; weights & biases resident (constant map).
    resident = lambda shape: pl.BlockSpec(shape, lambda i: (0, 0))
    out_padded = pl.pallas_call(
        _discriminator_kernel,
        out_shape=jax.ShapeDtypeStruct((b_pad, OUT_PAD), jnp.float32),
        grid=grid,
        in_specs=[
            pl.BlockSpec((tile_b, d_pad), lambda i: (i, 0)),      # x tile
            resident((d_pad, HIDDEN_PAD)),                        # w1
            resident((1, HIDDEN_PAD)),                            # b1
            resident((HIDDEN_PAD, HIDDEN_PAD)),                   # w2
            resident((1, HIDDEN_PAD)),                            # b2
            resident((HIDDEN_PAD, OUT_PAD)),                      # w3
            resident((1, OUT_PAD)),                               # b3
        ],
        out_specs=pl.BlockSpec((tile_b, OUT_PAD), lambda i: (i, 0)),
        compiler_params=pltpu.CompilerParams(
            dimension_semantics=("parallel",)),                   # megacore on v7x
    )(
        x_p,
        pparams["w1"], pparams["b1"],
        pparams["w2"], pparams["b2"],
        pparams["w3"], pparams["b3"],
    )
    # Drop batch padding and the 127 zero-padded output lanes.
    return out_padded[:B, :1]


def init_params(key, input_dim):
    """Unpadded f32 params mimicking PyTorch's default Linear init (uniform ±1/sqrt(fan_in)).
    w: [in, out], b: [1, out]."""
    ks = jax.random.split(key, 6)

    def lin(kw, kb, fan_in, fan_out):
        bound = 1.0 / jnp.sqrt(fan_in)
        w = jax.random.uniform(kw, (fan_in, fan_out), jnp.float32, -bound, bound)
        b = jax.random.uniform(kb, (1, fan_out), jnp.float32, -bound, bound)
        return w, b

    w1, b1 = lin(ks[0], ks[1], input_dim, HIDDEN)
    w2, b2 = lin(ks[2], ks[3], HIDDEN, HIDDEN)
    w3, b3 = lin(ks[4], ks[5], HIDDEN, 1)
    return {"w1": w1, "b1": b1, "w2": w2, "b2": b2, "w3": w3, "b3": b3}


def pad_params(params, input_dim):
    """Zero-pad widths to 128 and cast weights to bf16 (biases stay f32).
    Zero padding keeps the math identical on the real columns."""
    d_pad = _round_up(max(input_dim, 1), LANE)

    def pad_w(w, rows, cols):
        out = jnp.zeros((rows, cols), jnp.float32)
        out = out.at[: w.shape[0], : w.shape[1]].set(w)
        return out.astype(jnp.bfloat16)

    def pad_b(b, cols):
        out = jnp.zeros((1, cols), jnp.float32)
        return out.at[:, : b.shape[1]].set(b)

    return {
        "w1": pad_w(params["w1"], d_pad, HIDDEN_PAD),
        "b1": pad_b(params["b1"], HIDDEN_PAD),
        "w2": pad_w(params["w2"], HIDDEN_PAD, HIDDEN_PAD),
        "b2": pad_b(params["b2"], HIDDEN_PAD),
        "w3": pad_w(params["w3"], HIDDEN_PAD, OUT_PAD),
        "b3": pad_b(params["b3"], OUT_PAD),
        "d_pad": d_pad,
    }


def _reference_forward_f32(x, p):
    h1 = jnp.tanh(x @ p["w1"] + p["b1"])
    h2 = jnp.tanh(h1 @ p["w2"] + p["b2"])
    return h2 @ p["w3"] + p["b3"]


def _reference_forward_bf16(x, p):
    """Same math but with bf16 matmul inputs / f32 accumulation (mirrors the kernel)."""
    def dot(a, w):
        return jnp.dot(a.astype(jnp.bfloat16), w.astype(jnp.bfloat16),
                       preferred_element_type=jnp.float32)
    h1 = jnp.tanh(dot(x, p["w1"]) + p["b1"])
    h2 = jnp.tanh(dot(h1, p["w2"]) + p["b2"])
    return dot(h2, p["w3"]) + p["b3"]


if __name__ == "__main__":
    key = jax.random.PRNGKey(0)
    k_x, k_p = jax.random.split(key)

    batch, input_dim = 8, 32
    x = jax.random.normal(k_x, (batch, input_dim), jnp.float32)
    params = init_params(k_p, input_dim)
    pparams = pad_params(params, input_dim)

    out = discriminator_forward(x, pparams)
    out = jax.block_until_ready(out)
    assert out.shape == (batch, 1), out.shape

    # Tight check against a reference using the same bf16-input / f32-accum matmuls.
    ref_bf16 = _reference_forward_bf16(x, params)
    assert jnp.allclose(out, ref_bf16, atol=1e-3, rtol=1e-3), "mismatch vs bf16 reference"

    # Loose check against the full-f32 PyTorch-equivalent reference (bf16 rounding).
    ref_f32 = _reference_forward_f32(x, params)
    assert jnp.allclose(out, ref_f32, atol=3e-2, rtol=3e-2), "mismatch vs f32 reference"

    print("KERNEL_OK")
</pallas_src>

<mosaic_0001>
module attributes {stable_mosaic.version = 11 : i64} {
  func.func @_discriminator_kernel(%arg0: i32, %arg1: memref<128x128xbf16, #tpu.memory_space<vmem>>, %arg2: memref<128x128xbf16, #tpu.memory_space<vmem>>, %arg3: memref<1x128xf32, #tpu.memory_space<vmem>>, %arg4: memref<128x128xbf16, #tpu.memory_space<vmem>>, %arg5: memref<1x128xf32, #tpu.memory_space<vmem>>, %arg6: memref<128x128xbf16, #tpu.memory_space<vmem>>, %arg7: memref<1x128xf32, #tpu.memory_space<vmem>>, %arg8: memref<128x128xf32, #tpu.memory_space<vmem>>) attributes {dimension_semantics = [#tpu.dimension_semantics<parallel>], iteration_bounds = array<i64: 1>, scalar_prefetch = 0 : i64, scratch_operands = 0 : i64, tpu.core_type = #tpu.core_type<tc>, window_params = [{transform_indices = @transform_0, window_bounds = array<i64: 128, 128>}, {pipeline_mode = #tpu.pipeline_mode<synchronous>, transform_indices = @transform_1, window_bounds = array<i64: 128, 128>}, {pipeline_mode = #tpu.pipeline_mode<synchronous>, transform_indices = @transform_2, window_bounds = array<i64: 1, 128>}, {pipeline_mode = #tpu.pipeline_mode<synchronous>, transform_indices = @transform_3, window_bounds = array<i64: 128, 128>}, {pipeline_mode = #tpu.pipeline_mode<synchronous>, transform_indices = @transform_4, window_bounds = array<i64: 1, 128>}, {pipeline_mode = #tpu.pipeline_mode<synchronous>, transform_indices = @transform_5, window_bounds = array<i64: 128, 128>}, {pipeline_mode = #tpu.pipeline_mode<synchronous>, transform_indices = @transform_6, window_bounds = array<i64: 1, 128>}, {transform_indices = @transform_7, window_bounds = array<i64: 128, 128>}]} {
    %c0 = arith.constant 0 : index
    %c0_0 = arith.constant 0 : index
    %0 = vector.load %arg1[%c0, %c0_0] : memref<128x128xbf16, #tpu.memory_space<vmem>>, vector<128x128xbf16>
    %c0_1 = arith.constant 0 : index
    %c0_2 = arith.constant 0 : index
    %1 = vector.load %arg2[%c0_1, %c0_2] : memref<128x128xbf16, #tpu.memory_space<vmem>>, vector<128x128xbf16>
    %cst = arith.constant dense<0.000000e+00> : vector<128x128xf32>
    %2 = tpu.matmul %0, %1, %cst {dimension_numbers = #tpu.dot_dimension_numbers<[1], [0], [0], [1], [0, 0, 1, 1], [], []>} : vector<128x128xbf16>, vector<128x128xbf16>, vector<128x128xf32> -> vector<128x128xf32>
    %c0_3 = arith.constant 0 : index
    %c0_4 = arith.constant 0 : index
    %3 = vector.load %arg3[%c0_3, %c0_4] : memref<1x128xf32, #tpu.memory_space<vmem>>, vector<1x128xf32>
    %4 = vector.broadcast %3 : vector<1x128xf32> to vector<128x128xf32>
    %5 = arith.addf %2, %4 : vector<128x128xf32>
    %6 = math.tanh %5 : vector<128x128xf32>
    %7 = arith.truncf %6 : vector<128x128xf32> to vector<128x128xbf16>
    %c0_5 = arith.constant 0 : index
    %c0_6 = arith.constant 0 : index
    %8 = vector.load %arg4[%c0_5, %c0_6] : memref<128x128xbf16, #tpu.memory_space<vmem>>, vector<128x128xbf16>
    %cst_7 = arith.constant dense<0.000000e+00> : vector<128x128xf32>
    %9 = tpu.matmul %7, %8, %cst_7 {dimension_numbers = #tpu.dot_dimension_numbers<[1], [0], [0], [1], [0, 0, 1, 1], [], []>} : vector<128x128xbf16>, vector<128x128xbf16>, vector<128x128xf32> -> vector<128x128xf32>
    %c0_8 = arith.constant 0 : index
    %c0_9 = arith.constant 0 : index
    %10 = vector.load %arg5[%c0_8, %c0_9] : memref<1x128xf32, #tpu.memory_space<vmem>>, vector<1x128xf32>
    %11 = vector.broadcast %10 : vector<1x128xf32> to vector<128x128xf32>
    %12 = arith.addf %9, %11 : vector<128x128xf32>
    %13 = math.tanh %12 : vector<128x128xf32>
    %14 = arith.truncf %13 : vector<128x128xf32> to vector<128x128xbf16>
    %c0_10 = arith.constant 0 : index
    %c0_11 = arith.constant 0 : index
    %15 = vector.load %arg6[%c0_10, %c0_11] : memref<128x128xbf16, #tpu.memory_space<vmem>>, vector<128x128xbf16>
    %cst_12 = arith.constant dense<0.000000e+00> : vector<128x128xf32>
    %16 = tpu.matmul %14, %15, %cst_12 {dimension_numbers = #tpu.dot_dimension_numbers<[1], [0], [0], [1], [0, 0, 1, 1], [], []>} : vector<128x128xbf16>, vector<128x128xbf16>, vector<128x128xf32> -> vector<128x128xf32>
    %c0_13 = arith.constant 0 : index
    %c0_14 = arith.constant 0 : index
    %17 = vector.load %arg7[%c0_13, %c0_14] : memref<1x128xf32, #tpu.memory_space<vmem>>, vector<1x128xf32>
    %18 = vector.broadcast %17 : vector<1x128xf32> to vector<128x128xf32>
    %19 = arith.addf %16, %18 : vector<128x128xf32>
    %c0_15 = arith.constant 0 : index
    %c0_16 = arith.constant 0 : index
    %20 = vector.load %arg8[%c0_15, %c0_16] : memref<128x128xf32, #tpu.memory_space<vmem>>, vector<128x128xf32>
    tpu.vector_store %arg8[%c0_15, %c0_16], %19 {strides = array<i32>} : memref<128x128xf32, #tpu.memory_space<vmem>>, vector<128x128xf32>,
    return
  }
  func.func @transform_0(%arg0: i32) -> (i32, i32) {
    %c0_i32 = arith.constant 0 : i32
    %c0_i32_0 = arith.constant 0 : i32
    return %arg0, %c0_i32 : i32, i32
  }
  func.func @transform_1(%arg0: i32) -> (i32, i32) {
    %c0_i32 = arith.constant 0 : i32
    %c0_i32_0 = arith.constant 0 : i32
    %c0_i32_1 = arith.constant 0 : i32
    return %c0_i32, %c0_i32_0 : i32, i32
  }
  func.func @transform_2(%arg0: i32) -> (i32, i32) {
    %c0_i32 = arith.constant 0 : i32
    %c0_i32_0 = arith.constant 0 : i32
    %c0_i32_1 = arith.constant 0 : i32
    return %c0_i32, %c0_i32_0 : i32, i32
  }
  func.func @transform_3(%arg0: i32) -> (i32, i32) {
    %c0_i32 = arith.constant 0 : i32
    %c0_i32_0 = arith.constant 0 : i32
    %c0_i32_1 = arith.constant 0 : i32
    return %c0_i32, %c0_i32_0 : i32, i32
  }
  func.func @transform_4(%arg0: i32) -> (i32, i32) {
    %c0_i32 = arith.constant 0 : i32
    %c0_i32_0 = arith.constant 0 : i32
    %c0_i32_1 = arith.constant 0 : i32
    return %c0_i32, %c0_i32_0 : i32, i32
  }
  func.func @transform_5(%arg0: i32) -> (i32, i32) {
    %c0_i32 = arith.constant 0 : i32
    %c0_i32_0 = arith.constant 0 : i32
    %c0_i32_1 = arith.constant 0 : i32
    return %c0_i32, %c0_i32_0 : i32, i32
  }
  func.func @transform_6(%arg0: i32) -> (i32, i32) {
    %c0_i32 = arith.constant 0 : i32
    %c0_i32_0 = arith.constant 0 : i32
    %c0_i32_1 = arith.constant 0 : i32
    return %c0_i32, %c0_i32_0 : i32, i32
  }
  func.func @transform_7(%arg0: i32) -> (i32, i32) {
    %c0_i32 = arith.constant 0 : i32
    %c0_i32_0 = arith.constant 0 : i32
    return %arg0, %c0_i32 : i32, i32
  }
}

</mosaic_0001>

<bundles_post_ra>
// kernel: tpu_custom_call.1
= control target key start
LH: loop header
LB: loop body
LE: loop exit
PB: predicated region body
PF: predicated region fallthrough
CT: control target
= control target key end

     0   :  { %12 = vsyncpa [#allocation3], 0  ;;  %s1326_s0 = inlined_call_operand.hbm [shape: bf16[128,128], index: 0, kind: input, shape index: {}]   ;;  %s1327_s1 = inlined_call_operand.hbm [shape: bf16[128,128], index: 1, kind: input, shape index: {}]   ;;  %s1328_s2 = inlined_call_operand.vmem [shape: f32[1,128], index: 2, kind: input, shape index: {}]   ;;  %s1329_s3 = inlined_call_operand.hbm [shape: bf16[128,128], index: 3, kind: input, shape index: {}]   ;;  %s1330_s4 = inlined_call_operand.vmem [shape: f32[1,128], index: 4, kind: input, shape index: {}]   ;;  %s1331_s5 = inlined_call_operand.hbm [shape: bf16[128,128], index: 5, kind: input, shape index: {}]   ;;  %s1332_s6 = inlined_call_operand.vmem [shape: f32[1,128], index: 6, kind: input, shape index: {}]   ;;  %s1333_s7 = inlined_call_operand.hbm [shape: f32[128,128], index: 7, kind: output, shape index: {}]  }
   0x1   :  { %13 = vsyncpa [#allocation6], 0 }
   0x2   :  { %14 = vsyncpa [#allocation9], 0 }
   0x3   :  { %15 = vsyncpa [#allocation4], 0  ;;  %s1152_s24 = smov [#allocation5]   ;;  %s1153_s26 = smov [#allocation2]  }
   0x4   :  { %s33_s25 = sshll.u32 %s1152_s24, 4  ;;  %s21_s27 = sshll.u32 %s1153_s26, 4  ;;  %s34_s25 = int_to_ptr.vmem [resolvable:$true] %s33_s25  ;;  %s1201_s27 = int_to_ptr.vmem [resolvable:$true] %s21_s27 }
   0x5   :  { %s1034_s30 = scalar_lea.hbm %s1327_s1, 1024 }
   0x6   :  { %p1035_p0 = scmp.ne.s32.totalorder %s1327_s1, %s1034_s30  ;;  %p1038_p1 = scmp.lt.u32.totalorder %s1034_s30, %s1327_s1 }
   0x8   :  { %p1040_p2 = pnand %p1038_p1, %p1035_p0 }
   0xa   :  { %1043 = shalt.err (!%p1040_p2)
}
   0xb   :  { %s1044_s12 = scalar_lea.vmem %s34_s25, 1024  ;;  %p1049_p4 = scmp.lt.s32.totalorder %s34_s25, %s34_s25 }
   0xc   :  { %p1045_p3 = scmp.ne.s32.totalorder %s34_s25, %s1044_s12  ;;  %p1050_p5 = scmp.lt.s32.totalorder %s1044_s12, %s1044_s12 }
   0xe   :  { %p1051_p6 = por %p1050_p5, %p1049_p4 }
  0x10   :  { %p1052_p7 = pnand %p1051_p6, %p1045_p3 }
  0x12   :  { %1055 = shalt.err (!%p1052_p7)
}
  0x13   :  { %s1154_s13 = smov 64   ;;  %s1155_s14 = smov 4  }
  0x14   :  { %39 = dma.hbm_to_vmem [thread:$0]  %s1327_s1, 1024, %s34_s25, [#allocation6], %s1154_s13, %s1154_s13, %s1155_s14  }
  0x15   :  { %s1056_s19 = scalar_lea.hbm %s1326_s0, 1024 }
  0x16   :  { %p1057_p8 = scmp.ne.s32.totalorder %s1326_s0, %s1056_s19  ;;  %p1060_p9 = scmp.lt.u32.totalorder %s1056_s19, %s1326_s0 }
  0x18   :  { %p1062_p10 = pnand %p1060_p9, %p1057_p8 }
  0x1a   :  { %1065 = shalt.err (!%p1062_p10)
}
  0x1b   :  { %s1066_s24 = scalar_lea.vmem %s1201_s27, 1024  ;;  %p1071_p12 = scmp.lt.s32.totalorder %s1201_s27, %s1201_s27 }
  0x1c   :  { %p1067_p11 = scmp.ne.s32.totalorder %s1201_s27, %s1066_s24  ;;  %p1072_p13 = scmp.lt.s32.totalorder %s1066_s24, %s1066_s24 }
  0x1e   :  { %p1073_p0 = por %p1072_p13, %p1071_p12 }
  0x20   :  { %p1074_p1 = pnand %p1073_p0, %p1067_p11 }
  0x22   :  { %1077 = shalt.err (!%p1074_p1)
}
  0x23   :  { %27 = dma.hbm_to_vmem [thread:$0]  %s1326_s0, 1024, %s1201_s27, [#allocation3], %s1154_s13, %s1154_s13, %s1155_s14  }
  0x24   :  { %s1156_s26 = smov [#allocation7]   ;;  %s1157_s29 = smov [#allocation8]  }
  0x25   :  { %s47_s28 = sshll.u32 %s1156_s26, 4  ;;  %s61_s30 = sshll.u32 %s1157_s29, 4  ;;  %s48_s28 = int_to_ptr.vmem [resolvable:$true] %s47_s28  ;;  %s1238_s30 = int_to_ptr.vmem [resolvable:$true] %s61_s30 }
  0x26   :  { %s1078_s10 = scalar_lea.hbm %s1329_s3, 1024 }
  0x27   :  { %p1079_p2 = scmp.ne.s32.totalorder %s1329_s3, %s1078_s10  ;;  %p1082_p3 = scmp.lt.u32.totalorder %s1078_s10, %s1329_s3 }
  0x29   :  { %p1084_p4 = pnand %p1082_p3, %p1079_p2 }
  0x2b   :  { %1087 = shalt.err (!%p1084_p4)
}
  0x2c   :  { %s1088_s0 = scalar_lea.vmem %s48_s28, 1024  ;;  %p1093_p6 = scmp.lt.s32.totalorder %s48_s28, %s48_s28 }
  0x2d   :  { %p1089_p5 = scmp.ne.s32.totalorder %s48_s28, %s1088_s0  ;;  %p1094_p7 = scmp.lt.s32.totalorder %s1088_s0, %s1088_s0 }
  0x2f   :  { %p1095_p8 = por %p1094_p7, %p1093_p6 }
  0x31   :  { %p1096_p9 = pnand %p1095_p8, %p1089_p5 }
  0x33   :  { %1099 = shalt.err (!%p1096_p9)
}
  0x34   :  { %53 = dma.hbm_to_vmem [thread:$0]  %s1329_s3, 1024, %s48_s28, [#allocation6], %s1154_s13, %s1154_s13, %s1155_s14  }
  0x35   :  { %s1100_s20 = scalar_lea.hbm %s1331_s5, 1024 }
  0x36   :  { %p1101_p10 = scmp.ne.s32.totalorder %s1331_s5, %s1100_s20  ;;  %p1104_p11 = scmp.lt.u32.totalorder %s1100_s20, %s1331_s5 }
  0x38   :  { %p1106_p12 = pnand %p1104_p11, %p1101_p10 }
  0x3a   :  { %1109 = shalt.err (!%p1106_p12)
}
  0x3b   :  { %s1110_s1 = scalar_lea.vmem %s1238_s30, 1024  ;;  %p1115_p0 = scmp.lt.s32.totalorder %s1238_s30, %s1238_s30 }
  0x3c   :  { %p1111_p13 = scmp.ne.s32.totalorder %s1238_s30, %s1110_s1  ;;  %p1116_p1 = scmp.lt.s32.totalorder %s1110_s1, %s1110_s1 }
  0x3e   :  { %p1117_p2 = por %p1116_p1, %p1115_p0 }
  0x40   :  { %p1118_p3 = pnand %p1117_p2, %p1111_p13 }
  0x42   :  { %1121 = shalt.err (!%p1118_p3)
}
  0x43   :  { %67 = dma.hbm_to_vmem [thread:$0]  %s1331_s5, 1024, %s1238_s30, [#allocation9], %s1154_s13, %s1154_s13, %s1155_s14  }
  0x44   :  { %1144 = dma.done.wait [#allocation3], 1024  }
  0x45   :  { %1145 = vsyncadd [#allocation3], 4294966272 }
  0x46   :  { %1146 = dma.done.wait [#allocation6], 2048  }
  0x47   :  { %1147 = vsyncadd [#allocation6], 4294965248 }
  0x48   :  { %1148 = dma.done.wait [#allocation9], 1024  }
  0x49   :  { %1149 = vsyncadd [#allocation9], 4294966272  ;;  %v938_v0 = vld [vmem:[#allocation5] sm:$0xff]   ;;  %v939_v1 = vld [vmem:[#allocation5 + $0x8] sm:$0xff]  }
  0x4a   :  { %817 = vmatprep.subr.bf16.mxu0 %v938_v0  ;;  %v940_v2 = vld [vmem:[#allocation5 + $0x10] sm:$0xff]   ;;  %v941_v3 = vld [vmem:[#allocation5 + $0x18] sm:$0xff]   ;;  %v946_v4 = vld [vmem:[#allocation2] sm:$0xff]  }
  0x4b   :  { %818 = vmatpush3.bf16.msra.mxu0 %v938_v0  ;;  %833 = vmatprep.mubr.bf16.mxu0 %v946_v4  ;;  %v942_v5 = vld [vmem:[#allocation5 + $0x20] sm:$0xff]   ;;  %v943_v6 = vld [vmem:[#allocation5 + $0x28] sm:$0xff]   ;;  %v944_v9 = vld [vmem:[#allocation5 + $0x30] sm:$0xff]  }
  0x4c   :  { %819 = vmatprep.subr.bf16.mxu0 %v939_v1  ;;  %v954_v7 = vld [vmem:[#allocation7] sm:$0xff]   ;;  %v955_v8 = vld [vmem:[#allocation7 + $0x8] sm:$0xff]   ;;  %v956_v10 = vld [vmem:[#allocation7 + $0x10] sm:$0xff]  }
  0x4d   :  { %849 = vmatprep.subr.bf16.mxu1 %v954_v7  ;;  %v945_v11 = vld [vmem:[#allocation5 + $0x38] sm:$0xff]   ;;  %v947_v12 = vld [vmem:[#allocation2 + $0x8] sm:$0xff]   ;;  %v948_v13 = vld [vmem:[#allocation2 + $0x10] sm:$0xff]  }
  0x4e   :  { %850 = vmatpush3.bf16.msra.mxu1 %v954_v7  ;;  %v949_v14 = vld [vmem:[#allocation2 + $0x18] sm:$0xff]   ;;  %v950_v15 = vld [vmem:[#allocation2 + $0x20] sm:$0xff]   ;;  %v951_v16 = vld [vmem:[#allocation2 + $0x28] sm:$0xff]  }
  0x4f   :  { %820 = vmatpush3.bf16.msra.mxu0 %v939_v1  ;;  %851 = vmatprep.subr.bf16.mxu1 %v955_v8  ;;  %v952_v17 = vld [vmem:[#allocation2 + $0x30] sm:$0xff]   ;;  %v953_v18 = vld [vmem:[#allocation2 + $0x38] sm:$0xff]   ;;  %v958_v20 = vld [vmem:[#allocation7 + $0x20] sm:$0xff]  }
  0x50   :  { %821 = vmatprep.subr.bf16.mxu0 %v940_v2  ;;  %v957_v19 = vld [vmem:[#allocation7 + $0x18] sm:$0xff]   ;;  %v959_v21 = vld [vmem:[#allocation7 + $0x28] sm:$0xff]   ;;  %v960_v22 = vld [vmem:[#allocation7 + $0x30] sm:$0xff]  }
  0x51   :  { %v961_v23 = vld [vmem:[#allocation7 + $0x38] sm:$0xff]   ;;  %v962_v24 = vld [vmem:[#allocation8] sm:$0xff]   ;;  %v1275_v25 = vld [vmem:[#allocation8 + $0x8] sm:$0xff]  }
  0x52   :  { %852 = vmatpush3.bf16.msra.mxu1 %v955_v8  ;;  %v1278_v26 = vld [vmem:[#allocation8 + $0x10] sm:$0xff]   ;;  %v1286_v27 = vld [vmem:[%s1328_s2] ss:$0 sm:$0xff] }
  0x53   :  { %822 = vmatpush3.bf16.msra.mxu0 %v940_v2  ;;  %853 = vmatprep.subr.bf16.mxu1 %v956_v10 }
  0x54   :  { %823 = vmatprep.subr.bf16.mxu0 %v941_v3 }
  0x56   :  { %854 = vmatpush3.bf16.msra.mxu1 %v956_v10 }
  0x57   :  { %824 = vmatpush3.bf16.msra.mxu0 %v941_v3  ;;  %855 = vmatprep.subr.bf16.mxu1 %v957_v19 }
  0x58   :  { %825 = vmatprep.subr.bf16.mxu0 %v942_v5 }
  0x5a   :  { %856 = vmatpush3.bf16.msra.mxu1 %v957_v19 }
  0x5b   :  { %826 = vmatpush3.bf16.msra.mxu0 %v942_v5  ;;  %857 = vmatprep.subr.bf16.mxu1 %v958_v20 }
  0x5c   :  { %827 = vmatprep.subr.bf16.mxu0 %v943_v6 }
  0x5e   :  { %858 = vmatpush3.bf16.msra.mxu1 %v958_v20  ;;  %v965_v20 = vld [vmem:[#allocation8 + $0x18] sm:$0xff]  }
  0x5f   :  { %828 = vmatpush3.bf16.msra.mxu0 %v943_v6  ;;  %859 = vmatprep.subr.bf16.mxu1 %v959_v21 }
  0x60   :  { %829 = vmatprep.subr.bf16.mxu0 %v944_v9 }
  0x62   :  { %860 = vmatpush3.bf16.msra.mxu1 %v959_v21  ;;  %v966_v21 = vld [vmem:[#allocation8 + $0x20] sm:$0xff]  }
  0x63   :  { %830 = vmatpush3.bf16.msra.mxu0 %v944_v9  ;;  %861 = vmatprep.subr.bf16.mxu1 %v960_v22 }
  0x64   :  { %831 = vmatprep.subr.bf16.mxu0 %v945_v11 }
  0x66   :  { %862 = vmatpush3.bf16.msra.mxu1 %v960_v22  ;;  %v967_v22 = vld [vmem:[#allocation8 + $0x28] sm:$0xff]  }
  0x67   :  { %832 = vmatpush3.bf16.msra.mxu0 %v945_v11  ;;  %863 = vmatprep.subr.bf16.mxu1 %v961_v23 }
  0x68   :  { %881 = vmatprep.subr.bf16.mxu0 %v962_v24 }
  0x6a   :  { %834 = vmatmul.mubr.bf16.vlgmr.msra.gmra.mrb[0].mxu0 %v947_v12  ;;  %864 = vmatpush3.bf16.msra.mxu1 %v961_v23  ;;  %v968_v23 = vld [vmem:[#allocation8 + $0x30] sm:$0xff]  }
  0x6b   :  { %837 = vmatprep.mubr.bf16.mxu0 %v948_v13  ;;  %913 = vmatprep.subr.bf16.mxu1 %v962_v24 }
  0x6c   :  { %882 = vmatpush3.bf16.msra.mxu0 %v962_v24 }
  0x6d   :  { %883 = vmatprep.subr.bf16.mxu0 %v1275_v25 }
  0x70   :  { %884 = vmatpush3.bf16.msra.mxu0 %v1275_v25 }
  0x71   :  { %885 = vmatprep.subr.bf16.mxu0 %v1278_v26 }
  0x72   :  { %838 = vmatmul.mubr.bf16.gmra.mrb[4].mxu0 %v949_v14 }
  0x73   :  { %841 = vmatprep.mubr.bf16.mxu0 %v950_v15 }
  0x74   :  { %886 = vmatpush3.bf16.msra.mxu0 %v1278_v26 }
  0x75   :  { %887 = vmatprep.subr.bf16.mxu0 %v965_v20 }
  0x78   :  { %888 = vmatpush3.bf16.msra.mxu0 %v965_v20 }
  0x79   :  { %889 = vmatprep.subr.bf16.mxu0 %v966_v21 }
  0x7a   :  { %842 = vmatmul.mubr.bf16.gmra.mrb[8].mxu0 %v951_v16 }
  0x7b   :  { %845 = vmatprep.mubr.bf16.mxu0 %v952_v17 }
  0x7c   :  { %890 = vmatpush3.bf16.msra.mxu0 %v966_v21 }
  0x7d   :  { %891 = vmatprep.subr.bf16.mxu0 %v967_v22 }
  0x80   :  { %892 = vmatpush3.bf16.msra.mxu0 %v967_v22 }
  0x81   :  { %893 = vmatprep.subr.bf16.mxu0 %v968_v23 }
  0x82   :  { %846 = vmatmul.mubr.bf16.gmra.mrb[12].mxu0 %v953_v18 }
  0x84   :  { %894 = vmatpush3.bf16.msra.mxu0 %v968_v23 }
 0x13d   :  { %v835_v28 = vpop.f32.mrb[0].mxu0 }
 0x13e   :  { %v261_v29 = vadd.f32 %v835_v28, %v1286_v27  ;;  %v252_v30 = vpop.f32.mrb[1].mxu0 }
 0x13f   :  { %v253_v31 = vadd.f32 %v1286_v27, %v252_v30  ;;  %v836_v32 = vpop.f32.mrb[2].mxu0 }
 0x140   :  { %970 = vtanh.f32 %v261_v29  ;;  %v264_v33 = vadd.f32 %v836_v32, %v1286_v27  ;;  %v255_v34 = vpop.f32.mrb[3].mxu0 }
 0x141   :  { %972 = vtanh.f32 %v253_v31  ;;  %v256_v35 = vadd.f32 %v1286_v27, %v255_v34 }
 0x142   :  { %974 = vtanh.f32 %v264_v33 }
 0x143   :  { %976 = vtanh.f32 %v256_v35 }
 0x145   :  { %v839_v36 = vpop.f32.mrb[4].mxu0 }
 0x146   :  { %v277_v37 = vadd.f32 %v839_v36, %v1286_v27  ;;  %v268_v38 = vpop.f32.mrb[5].mxu0 }
 0x147   :  { %v269_v39 = vadd.f32 %v1286_v27, %v268_v38  ;;  %v840_v40 = vpop.f32.mrb[6].mxu0 }
 0x148   :  { %978 = vtanh.f32 %v277_v37  ;;  %v280_v41 = vadd.f32 %v840_v40, %v1286_v27  ;;  %v271_v42 = vpop.f32.mrb[7].mxu0 }
 0x149   :  { %980 = vtanh.f32 %v269_v39  ;;  %v272_v43 = vadd.f32 %v1286_v27, %v271_v42 }
 0x14a   :  { %v971_v44 = vpop.eup %970  ;;  %982 = vtanh.f32 %v280_v41 }
 0x14b   :  { %v973_v45 = vpop.eup %972  ;;  %984 = vtanh.f32 %v272_v43 }
 0x14c   :  { %v975_v46 = vpop.eup %974 }
 0x14d   :  { %v977_v47 = vpop.eup %976  ;;  %v843_v48 = vpop.f32.mrb[8].mxu0  ;;  %v332_v49 = vpack.c.bf16 %v975_v46, %v971_v44 }
 0x14e   :  { %v293_v50 = vadd.f32 %v843_v48, %v1286_v27  ;;  %v284_v51 = vpop.f32.mrb[9].mxu0  ;;  %v331_v52 = vpack.c.bf16 %v977_v47, %v973_v45 }
 0x14f   :  { %v285_v53 = vadd.f32 %v1286_v27, %v284_v51  ;;  %v844_v54 = vpop.f32.mrb[10].mxu0 }
 0x150   :  { %986 = vtanh.f32 %v293_v50  ;;  %v296_v55 = vadd.f32 %v844_v54, %v1286_v27  ;;  %v287_v56 = vpop.f32.mrb[11].mxu0  ;;  %865 = vmatprep.mubr.bf16.mxu1 %v331_v52 }
 0x151   :  { %988 = vtanh.f32 %v285_v53  ;;  %v288_v57 = vadd.f32 %v1286_v27, %v287_v56  ;;  %866 = vmatmul.mubr.bf16.vlgmr.msra.gmra.mrb[0].mxu1 %v332_v49 }
 0x152   :  { %v979_v58 = vpop.eup %978  ;;  %990 = vtanh.f32 %v296_v55  ;;  %921 = vmatpush3.bf16.msra.mxu1 %v962_v24  ;;  %v969_v24 = vld [vmem:[#allocation8 + $0x38] sm:$0xff]  }
 0x153   :  { %v981_v59 = vpop.eup %980  ;;  %992 = vtanh.f32 %v288_v57  ;;  %914 = vmatprep.subr.bf16.mxu1 %v1275_v25  ;;  %895 = vmatprep.subr.bf16.mxu0 %v969_v24 }
 0x154   :  { %v983_v60 = vpop.eup %982  ;;  %896 = vmatpush3.bf16.msra.mxu0 %v969_v24 }
 0x155   :  { %v985_v61 = vpop.eup %984  ;;  %v847_v62 = vpop.f32.mrb[12].mxu0  ;;  %v334_v63 = vpack.c.bf16 %v983_v60, %v979_v58 }
 0x156   :  { %v309_v0 = vadd.f32 %v847_v62, %v1286_v27  ;;  %v300_v1 = vpop.f32.mrb[13].mxu0  ;;  %v333_v2 = vpack.c.bf16 %v985_v61, %v981_v59  ;;  %922 = vmatpush3.bf16.msra.mxu1 %v1275_v25  ;;  %v751_v25 = vld [vmem:[%s1330_s4] ss:$0 sm:$0xff] }
 0x157   :  { %v301_v3 = vadd.f32 %v1286_v27, %v300_v1  ;;  %v848_v4 = vpop.f32.mrb[14].mxu0  ;;  %915 = vmatprep.subr.bf16.mxu1 %v1278_v26 }
 0x158   :  { %994 = vtanh.f32 %v309_v0  ;;  %v312_v5 = vadd.f32 %v848_v4, %v1286_v27  ;;  %v303_v6 = vpop.f32.mrb[15].mxu0  ;;  %869 = vmatprep.mubr.bf16.mxu1 %v333_v2 }
 0x159   :  { %996 = vtanh.f32 %v301_v3  ;;  %v304_v7 = vadd.f32 %v1286_v27, %v303_v6  ;;  %870 = vmatmul.mubr.bf16.gmra.mrb[4].mxu1 %v334_v63 }
 0x15a   :  { %v987_v8 = vpop.eup %986  ;;  %998 = vtanh.f32 %v312_v5  ;;  %923 = vmatpush3.bf16.msra.mxu1 %v1278_v26 }
 0x15b   :  { %v989_v9 = vpop.eup %988  ;;  %1000 = vtanh.f32 %v304_v7  ;;  %916 = vmatprep.subr.bf16.mxu1 %v965_v20 }
 0x15c   :  { %v991_v10 = vpop.eup %990 }
 0x15d   :  { %v993_v11 = vpop.eup %992  ;;  %v336_v12 = vpack.c.bf16 %v991_v10, %v987_v8 }
 0x15e   :  { %v335_v13 = vpack.c.bf16 %v993_v11, %v989_v9  ;;  %924 = vmatpush3.bf16.msra.mxu1 %v965_v20 }
 0x15f   :  { %917 = vmatprep.subr.bf16.mxu1 %v966_v21 }
 0x160   :  { %873 = vmatprep.mubr.bf16.mxu1 %v335_v13 }
 0x161   :  { %874 = vmatmul.mubr.bf16.gmra.mrb[8].mxu1 %v336_v12 }
 0x162   :  { %v995_v14 = vpop.eup %994  ;;  %925 = vmatpush3.bf16.msra.mxu1 %v966_v21 }
 0x163   :  { %v997_v15 = vpop.eup %996  ;;  %918 = vmatprep.subr.bf16.mxu1 %v967_v22 }
 0x164   :  { %v999_v16 = vpop.eup %998 }
 0x165   :  { %v1001_v17 = vpop.eup %1000  ;;  %v338_v18 = vpack.c.bf16 %v999_v16, %v995_v14 }
 0x166   :  { %v337_v19 = vpack.c.bf16 %v1001_v17, %v997_v15  ;;  %926 = vmatpush3.bf16.msra.mxu1 %v967_v22 }
 0x167   :  { %919 = vmatprep.subr.bf16.mxu1 %v968_v23 }
 0x168   :  { %877 = vmatprep.mubr.bf16.mxu1 %v337_v19 }
 0x169   :  { %878 = vmatmul.mubr.bf16.gmra.mrb[12].mxu1 %v338_v18  ;;  %v760_v18 = vld [vmem:[%s1332_s6] ss:$0 sm:$0xff]  ;;  %s1158_s6 = smov [#allocation10]  }
 0x16a   :  { %927 = vmatpush3.bf16.msra.mxu1 %v968_v23  ;;  %s720_s28 = sshll.u32 %s1158_s6, 4  ;;  %s721_s28 = int_to_ptr.vmem [resolvable:$true] %s720_s28 }
 0x16b   :  { %920 = vmatprep.subr.bf16.mxu1 %v969_v24  ;;  %s1122_s29 = scalar_lea.vmem %s721_s28, 2048  ;;  %p1127_p5 = scmp.lt.s32.totalorder %s721_s28, %s721_s28 }
 0x16c   :  { %p1123_p4 = scmp.ne.s32.totalorder %s721_s28, %s1122_s29  ;;  %p1128_p6 = scmp.lt.s32.totalorder %s1122_s29, %s1122_s29 }
 0x16e   :  { %928 = vmatpush3.bf16.msra.mxu1 %v969_v24  ;;  %p1129_p7 = por %p1128_p6, %p1127_p5 }
 0x170   :  { %p1130_p8 = pnand %p1129_p7, %p1123_p4 }
 0x224   :  { %v867_v26 = vpop.f32.mrb[0].mxu1 }
 0x225   :  { %v453_v27 = vadd.f32 %v867_v26, %v751_v25  ;;  %v444_v28 = vpop.f32.mrb[1].mxu1 }
 0x226   :  { %v445_v29 = vadd.f32 %v751_v25, %v444_v28  ;;  %v868_v30 = vpop.f32.mrb[2].mxu1 }
 0x227   :  { %1002 = vtanh.f32 %v453_v27  ;;  %v456_v31 = vadd.f32 %v868_v30, %v751_v25  ;;  %v447_v32 = vpop.f32.mrb[3].mxu1 }
 0x228   :  { %1004 = vtanh.f32 %v445_v29  ;;  %v448_v33 = vadd.f32 %v751_v25, %v447_v32 }
 0x229   :  { %1006 = vtanh.f32 %v456_v31 }
 0x22a   :  { %1008 = vtanh.f32 %v448_v33 }
 0x22c   :  { %v871_v34 = vpop.f32.mrb[4].mxu1 }
 0x22d   :  { %v469_v35 = vadd.f32 %v871_v34, %v751_v25  ;;  %v460_v36 = vpop.f32.mrb[5].mxu1 }
 0x22e   :  { %v461_v37 = vadd.f32 %v751_v25, %v460_v36  ;;  %v872_v38 = vpop.f32.mrb[6].mxu1 }
 0x22f   :  { %1010 = vtanh.f32 %v469_v35  ;;  %v472_v39 = vadd.f32 %v872_v38, %v751_v25  ;;  %v463_v40 = vpop.f32.mrb[7].mxu1 }
 0x230   :  { %1012 = vtanh.f32 %v461_v37  ;;  %v464_v41 = vadd.f32 %v751_v25, %v463_v40 }
 0x231   :  { %v1003_v42 = vpop.eup %1002  ;;  %1014 = vtanh.f32 %v472_v39 }
 0x232   :  { %v1005_v43 = vpop.eup %1004  ;;  %1016 = vtanh.f32 %v464_v41 }
 0x233   :  { %v1007_v44 = vpop.eup %1006 }
 0x234   :  { %v1009_v45 = vpop.eup %1008  ;;  %v875_v46 = vpop.f32.mrb[8].mxu1  ;;  %v524_v47 = vpack.c.bf16 %v1007_v44, %v1003_v42 }
 0x235   :  { %v485_v48 = vadd.f32 %v875_v46, %v751_v25  ;;  %v476_v49 = vpop.f32.mrb[9].mxu1  ;;  %v523_v50 = vpack.c.bf16 %v1009_v45, %v1005_v43 }
 0x236   :  { %v477_v51 = vadd.f32 %v751_v25, %v476_v49  ;;  %v876_v52 = vpop.f32.mrb[10].mxu1 }
 0x237   :  { %1018 = vtanh.f32 %v485_v48  ;;  %v488_v53 = vadd.f32 %v876_v52, %v751_v25  ;;  %v479_v54 = vpop.f32.mrb[11].mxu1  ;;  %897 = vmatprep.mubr.bf16.mxu0 %v523_v50 }
 0x238   :  { %1020 = vtanh.f32 %v477_v51  ;;  %v480_v55 = vadd.f32 %v751_v25, %v479_v54  ;;  %898 = vmatmul.mubr.bf16.vlgmr.msra.gmra.mrb[16].mxu0 %v524_v47 }
 0x239   :  { %v1011_v56 = vpop.eup %1010  ;;  %1022 = vtanh.f32 %v488_v53 }
 0x23a   :  { %v1013_v57 = vpop.eup %1012  ;;  %1024 = vtanh.f32 %v480_v55 }
 0x23b   :  { %v1015_v58 = vpop.eup %1014 }
 0x23c   :  { %v1017_v59 = vpop.eup %1016  ;;  %v879_v60 = vpop.f32.mrb[12].mxu1  ;;  %v526_v61 = vpack.c.bf16 %v1015_v58, %v1011_v56 }
 0x23d   :  { %v501_v62 = vadd.f32 %v879_v60, %v751_v25  ;;  %v492_v63 = vpop.f32.mrb[13].mxu1  ;;  %v525_v0 = vpack.c.bf16 %v1017_v59, %v1013_v57 }
 0x23e   :  { %v493_v1 = vadd.f32 %v751_v25, %v492_v63  ;;  %v880_v2 = vpop.f32.mrb[14].mxu1 }
 0x23f   :  { %1026 = vtanh.f32 %v501_v62  ;;  %v504_v3 = vadd.f32 %v880_v2, %v751_v25  ;;  %v495_v4 = vpop.f32.mrb[15].mxu1  ;;  %901 = vmatprep.mubr.bf16.mxu0 %v525_v0 }
 0x240   :  { %1028 = vtanh.f32 %v493_v1  ;;  %v496_v5 = vadd.f32 %v751_v25, %v495_v4  ;;  %902 = vmatmul.mubr.bf16.gmra.mrb[20].mxu0 %v526_v61 }
 0x241   :  { %v1019_v6 = vpop.eup %1018  ;;  %1030 = vtanh.f32 %v504_v3 }
 0x242   :  { %v1021_v7 = vpop.eup %1020  ;;  %1032 = vtanh.f32 %v496_v5 }
 0x243   :  { %v1023_v8 = vpop.eup %1022 }
 0x244   :  { %v1025_v9 = vpop.eup %1024  ;;  %v528_v10 = vpack.c.bf16 %v1023_v8, %v1019_v6 }
 0x245   :  { %v527_v11 = vpack.c.bf16 %v1025_v9, %v1021_v7 }
 0x247   :  { %905 = vmatprep.mubr.bf16.mxu1 %v527_v11 }
 0x248   :  { %906 = vmatmul.mubr.bf16.vlgmr.msra.gmra.mrb[16].mxu1 %v528_v10 }
 0x249   :  { %v1027_v12 = vpop.eup %1026 }
 0x24a   :  { %v1029_v13 = vpop.eup %1028 }
 0x24b   :  { %v1031_v14 = vpop.eup %1030 }
 0x24c   :  { %v1033_v15 = vpop.eup %1032  ;;  %v530_v16 = vpack.c.bf16 %v1031_v14, %v1027_v12 }
 0x24d   :  { %v529_v17 = vpack.c.bf16 %v1033_v15, %v1029_v13 }
 0x24f   :  { %909 = vmatprep.mubr.bf16.mxu1 %v529_v17 }
 0x250   :  { %910 = vmatmul.mubr.bf16.gmra.mrb[20].mxu1 %v530_v16 }
 0x30b   :  { %v899_v19 = vpop.f32.mrb[16].mxu0 }
 0x30c   :  { %v645_v20 = vadd.f32 %v899_v19, %v760_v18  ;;  %v636_v21 = vpop.f32.mrb[17].mxu0 }
 0x30d   :  { %v637_v22 = vadd.f32 %v760_v18, %v636_v21  ;;  %v900_v23 = vpop.f32.mrb[18].mxu0 }
 0x30e   :  { %701 = vst [vmem:[#allocation10 + $0x10] sm:$0xff] %v645_v20  ;;  %v648_v24 = vadd.f32 %v900_v23, %v760_v18  ;;  %v639_v25 = vpop.f32.mrb[19].mxu0 }
 0x30f   :  { %699 = vst [vmem:[#allocation10] sm:$0xff] %v637_v22  ;;  %v640_v26 = vadd.f32 %v760_v18, %v639_v25 }
 0x310   :  { %702 = vst [vmem:[#allocation10 + $0x18] sm:$0xff] %v648_v24 }
 0x311   :  { %700 = vst [vmem:[#allocation10 + $0x8] sm:$0xff] %v640_v26 }
 0x313   :  { %v903_v27 = vpop.f32.mrb[20].mxu0 }
 0x314   :  { %v661_v28 = vadd.f32 %v903_v27, %v760_v18  ;;  %v652_v29 = vpop.f32.mrb[21].mxu0 }
 0x315   :  { %v653_v30 = vadd.f32 %v760_v18, %v652_v29  ;;  %v904_v31 = vpop.f32.mrb[22].mxu0 }
 0x316   :  { %705 = vst [vmem:[#allocation10 + $0x30] sm:$0xff] %v661_v28  ;;  %v664_v32 = vadd.f32 %v904_v31, %v760_v18  ;;  %v655_v33 = vpop.f32.mrb[23].mxu0 }
 0x317   :  { %703 = vst [vmem:[#allocation10 + $0x20] sm:$0xff] %v653_v30  ;;  %v656_v34 = vadd.f32 %v760_v18, %v655_v33 }
 0x318   :  { %706 = vst [vmem:[#allocation10 + $0x38] sm:$0xff] %v664_v32 }
 0x319   :  { %704 = vst [vmem:[#allocation10 + $0x28] sm:$0xff] %v656_v34 }
 0x31b   :  { %v907_v35 = vpop.f32.mrb[16].mxu1 }
 0x31c   :  { %v677_v36 = vadd.f32 %v907_v35, %v760_v18  ;;  %v668_v37 = vpop.f32.mrb[17].mxu1 }
 0x31d   :  { %v669_v38 = vadd.f32 %v760_v18, %v668_v37  ;;  %v908_v39 = vpop.f32.mrb[18].mxu1 }
 0x31e   :  { %709 = vst [vmem:[#allocation10 + $0x50] sm:$0xff] %v677_v36  ;;  %v680_v40 = vadd.f32 %v908_v39, %v760_v18  ;;  %v671_v41 = vpop.f32.mrb[19].mxu1 }
 0x31f   :  { %707 = vst [vmem:[#allocation10 + $0x40] sm:$0xff] %v669_v38  ;;  %v672_v42 = vadd.f32 %v760_v18, %v671_v41 }
 0x320   :  { %710 = vst [vmem:[#allocation10 + $0x58] sm:$0xff] %v680_v40 }
 0x321   :  { %708 = vst [vmem:[#allocation10 + $0x48] sm:$0xff] %v672_v42 }
 0x323   :  { %v911_v43 = vpop.f32.mrb[20].mxu1 }
 0x324   :  { %v693_v44 = vadd.f32 %v911_v43, %v760_v18  ;;  %v684_v45 = vpop.f32.mrb[21].mxu1 }
 0x325   :  { %v685_v46 = vadd.f32 %v760_v18, %v684_v45  ;;  %v912_v47 = vpop.f32.mrb[22].mxu1 }
 0x326   :  { %713 = vst [vmem:[#allocation10 + $0x70] sm:$0xff] %v693_v44  ;;  %v696_v48 = vadd.f32 %v912_v47, %v760_v18  ;;  %v687_v49 = vpop.f32.mrb[23].mxu1 }
 0x327   :  { %711 = vst [vmem:[#allocation10 + $0x60] sm:$0xff] %v685_v46  ;;  %v688_v50 = vadd.f32 %v760_v18, %v687_v49 }
 0x328   :  { %714 = vst [vmem:[#allocation10 + $0x78] sm:$0xff] %v696_v48 }
 0x329   :  { %712 = vst [vmem:[#allocation10 + $0x68] sm:$0xff] %v688_v50 }
 0x32a   :  { %1133 = shalt.err (!%p1130_p8)
}
 0x32b   :  { %s1134_s9 = scalar_lea.hbm %s1333_s7, 2048 }
 0x32c   :  { %p1135_p9 = scmp.ne.s32.totalorder %s1333_s7, %s1134_s9  ;;  %p1138_p10 = scmp.lt.u32.totalorder %s1134_s9, %s1333_s7 }
 0x32e   :  { %p1140_p11 = pnand %p1138_p10, %p1135_p9 }
 0x330   :  { %1143 = shalt.err (!%p1140_p11)
}
 0x331   :  { %s1159_s16 = smov 128   ;;  %s1160_s0 = smov 8  }
 0x332   :  { %726 = dma.vmem_to_hbm [thread:$0]  %s721_s28, 2048, %s1333_s7, [#allocation4], %s1159_s16, %s1159_s16, %s1160_s0  }
 0x333   :  { %1150 = dma.done.wait [#allocation4], 2048  }
 0x334   :  { %1151 = vsyncadd [#allocation4], 4294965248 }
 0x335   :  { %730 = vsyncpa [#allocation3], 1 }
 0x336   :  { %731 = vsyncpa [#allocation6], 1 }
 0x337   :  { %732 = vsyncpa [#allocation9], 1 }
 0x338   :  { %733 = vsyncpa [#allocation4], 1 }

</bundles_post_ra>
